<compile_context>
chip_gen: v5e
topology: v5e:2x2
jax: 0.10.0
libtpu: 0.0.40
codegen_flags: <defaults>
</compile_context>

<pallas_src>
import math

import jax
import jax.numpy as jnp
from jax.experimental import pallas as pl
from jax.experimental.pallas import tpu as pltpu

_SUB = 8
_LANE = 128
_GRP = _SUB * _LANE  # 1024 elements per (8, 128) group


def _fused_sums_kernel(x_ref, y_ref, acc_ref):
    """Accumulate per-sample [sum(x*x), sum(y*y), sum(x*y)] as (8,128) slabs.

    x_ref, y_ref: (1, tile_g, 8, 128) blocks of one sample.
    acc_ref:      (1, 3, 8, 128) output block, VMEM-resident across the
                  reduction grid axis (same block index for every r).
    """
    r = pl.program_id(1)

    @pl.when(r == 0)
    def _():
        acc_ref[...] = jnp.zeros_like(acc_ref)

    x = x_ref[0].astype(jnp.float32)  # (tile_g, 8, 128)
    y = y_ref[0].astype(jnp.float32)
    # Leading-axis reductions preserve the (8,128) vreg tile -> plain VPU adds.
    acc_ref[0, 0] += jnp.sum(x * x, axis=0)
    acc_ref[0, 1] += jnp.sum(y * y, axis=0)
    acc_ref[0, 2] += jnp.sum(x * y, axis=0)


def normalized_mse_loss(x, y, *, tile_g=512):
    """NormalizedMSELoss(size_average=True, reduce=True) forward.

    x, y: arrays of identical shape, leading axis = batch (e.g. NCHW).
    Returns a float32 scalar.
    """
    assert x.shape == y.shape, (x.shape, y.shape)
    B = x.shape[0]
    D = math.prod(x.shape[1:])

    G = -(-D // _GRP)                  # (8,128) groups per sample (ceil)
    n_tiles = max(1, -(-G // tile_g))  # grid steps along reduction axis
    tile_g = -(-G // n_tiles)          # balanced tile; padding < one tile
    Gp = n_tiles * tile_g
    Dp = Gp * _GRP

    xf = x.reshape(B, D)
    yf = y.reshape(B, D)
    if Dp != D:
        # Zero padding is exact: zeros contribute nothing to any of the sums.
        xf = jnp.pad(xf, ((0, 0), (0, Dp - D)))
        yf = jnp.pad(yf, ((0, 0), (0, Dp - D)))
    x4 = xf.reshape(B, Gp, _SUB, _LANE)
    y4 = yf.reshape(B, Gp, _SUB, _LANE)

    acc = pl.pallas_call(
        _fused_sums_kernel,
        out_shape=jax.ShapeDtypeStruct((B, 3, _SUB, _LANE), jnp.float32),
        grid_spec=pltpu.PrefetchScalarGridSpec(
            num_scalar_prefetch=0,
            grid=(B, n_tiles),
            in_specs=[
                pl.BlockSpec((1, tile_g, _SUB, _LANE), lambda b, r: (b, r, 0, 0)),
                pl.BlockSpec((1, tile_g, _SUB, _LANE), lambda b, r: (b, r, 0, 0)),
            ],
            out_specs=pl.BlockSpec((1, 3, _SUB, _LANE), lambda b, r: (b, 0, 0, 0)),
        ),
        compiler_params=pltpu.CompilerParams(
            dimension_semantics=("parallel", "arbitrary")),
    )(x4, y4)

    # Tiny epilogue in plain JAX: final cross-lane/sublane reduce + rsqrt.
    sums = jnp.sum(acc, axis=(2, 3))              # (B, 3)
    sx, sy, sxy = sums[:, 0], sums[:, 1], sums[:, 2]
    inv_nx = jax.lax.rsqrt(sx)                    # 1 / ||x_b||
    inv_ny = jax.lax.rsqrt(sy)                    # 1 / ||y_b||
    # sum_d (x/nx - y/ny)^2 = sx/nx^2 + sy/ny^2 - 2*sxy/(nx*ny)
    per_sample = (sx * inv_nx * inv_nx
                  + sy * inv_ny * inv_ny
                  - 2.0 * sxy * inv_nx * inv_ny)
    return jnp.sum(per_sample)


def _reference(x, y):
    B = x.shape[0]
    xf = x.reshape(B, -1).astype(jnp.float32)
    yf = y.reshape(B, -1).astype(jnp.float32)
    nx = jnp.sqrt(jnp.sum(xf * xf, axis=1, keepdims=True))
    ny = jnp.sqrt(jnp.sum(yf * yf, axis=1, keepdims=True))
    d = xf / nx - yf / ny
    return jnp.sum(d * d)


if __name__ == "__main__":
    key = jax.random.PRNGKey(0)
    kx, ky = jax.random.split(key)
    # NCHW inputs, as the PyTorch module would receive.
    x = jax.random.normal(kx, (2, 4, 16, 16), dtype=jnp.float32)
    y = jax.random.normal(ky, (2, 4, 16, 16), dtype=jnp.float32)

    loss = jax.jit(normalized_mse_loss)(x, y)
    jax.block_until_ready(loss)

    ref = _reference(x, y)
    assert jnp.allclose(loss, ref, rtol=1e-5, atol=1e-5), (loss, ref)
    print("KERNEL_OK")
</pallas_src>

<mosaic_0001>
module attributes {stable_mosaic.version = 11 : i64} {
  func.func @_fused_sums_kernel(%arg0: i32, %arg1: i32, %arg2: memref<1x1x8x128xf32, #tpu.memory_space<vmem>>, %arg3: memref<1x1x8x128xf32, #tpu.memory_space<vmem>>, %arg4: memref<1x3x8x128xf32, #tpu.memory_space<vmem>>) attributes {dimension_semantics = [#tpu.dimension_semantics<parallel>, #tpu.dimension_semantics<arbitrary>], iteration_bounds = array<i64: 2, 1>, scalar_prefetch = 0 : i64, scratch_operands = 0 : i64, tpu.core_type = #tpu.core_type<tc>, window_params = [{transform_indices = @transform_0, window_bounds = array<i64: 1, 1, 8, 128>}, {transform_indices = @transform_1, window_bounds = array<i64: 1, 1, 8, 128>}, {transform_indices = @transform_2, window_bounds = array<i64: 1, 3, 8, 128>}]} {
    %c0_i32 = arith.constant 0 : i32
    %0 = arith.cmpi eq, %arg1, %c0_i32 : i32
    %1 = arith.extui %0 : i1 to i32
    %c0_i32_0 = arith.constant 0 : i32
    %2 = arith.cmpi ne, %1, %c0_i32_0 : i32
    scf.if %2 {
      %cst_32 = arith.constant 0.000000e+00 : f32
      %31 = vector.broadcast %cst_32 : f32 to vector<1x3x8x128xf32>
      %c0_33 = arith.constant 0 : index
      %c0_34 = arith.constant 0 : index
      %c0_35 = arith.constant 0 : index
      %c0_36 = arith.constant 0 : index
      %32 = vector.load %arg4[%c0_33, %c0_34, %c0_35, %c0_36] : memref<1x3x8x128xf32, #tpu.memory_space<vmem>>, vector<1x3x8x128xf32>
      tpu.vector_store %arg4[%c0_33, %c0_34, %c0_35, %c0_36], %31 {strides = array<i32>} : memref<1x3x8x128xf32, #tpu.memory_space<vmem>>, vector<1x3x8x128xf32>,
    } else {
    }
    %c0 = arith.constant 0 : index
    %c0_1 = arith.constant 0 : index
    %c0_2 = arith.constant 0 : index
    %c0_3 = arith.constant 0 : index
    %3 = vector.load %arg2[%c0, %c0_1, %c0_2, %c0_3] : memref<1x1x8x128xf32, #tpu.memory_space<vmem>>, vector<1x1x8x128xf32>
    %4 = vector.shape_cast %3 : vector<1x1x8x128xf32> to vector<1x8x128xf32>
    %c0_4 = arith.constant 0 : index
    %c0_5 = arith.constant 0 : index
    %c0_6 = arith.constant 0 : index
    %c0_7 = arith.constant 0 : index
    %5 = vector.load %arg3[%c0_4, %c0_5, %c0_6, %c0_7] : memref<1x1x8x128xf32, #tpu.memory_space<vmem>>, vector<1x1x8x128xf32>
    %6 = vector.shape_cast %5 : vector<1x1x8x128xf32> to vector<1x8x128xf32>
    %c0_8 = arith.constant 0 : index
    %c0_9 = arith.constant 0 : index
    %c0_10 = arith.constant 0 : index
    %c0_11 = arith.constant 0 : index
    %7 = vector.load %arg4[%c0_8, %c0_9, %c0_10, %c0_11] : memref<1x3x8x128xf32, #tpu.memory_space<vmem>>, vector<1x1x8x128xf32>
    %8 = vector.shape_cast %7 : vector<1x1x8x128xf32> to vector<8x128xf32>
    %9 = arith.mulf %4, %4 : vector<1x8x128xf32>
    %cst = arith.constant dense<0.000000e+00> : vector<8x128xf32>
    %10 = vector.multi_reduction <add>, %9, %cst [0] : vector<1x8x128xf32> to vector<8x128xf32>
    %11 = arith.addf %8, %10 : vector<8x128xf32>
    %c0_12 = arith.constant 0 : index
    %c0_13 = arith.constant 0 : index
    %c0_14 = arith.constant 0 : index
    %c0_15 = arith.constant 0 : index
    %12 = vector.load %arg4[%c0_12, %c0_13, %c0_14, %c0_15] : memref<1x3x8x128xf32, #tpu.memory_space<vmem>>, vector<1x1x8x128xf32>
    %13 = vector.shape_cast %12 : vector<1x1x8x128xf32> to vector<8x128xf32>
    %14 = vector.shape_cast %11 : vector<8x128xf32> to vector<1x1x8x128xf32>
    tpu.vector_store %arg4[%c0_12, %c0_13, %c0_14, %c0_15], %14 {strides = array<i32>} : memref<1x3x8x128xf32, #tpu.memory_space<vmem>>, vector<1x1x8x128xf32>,
    %c0_16 = arith.constant 0 : index
    %c1 = arith.constant 1 : index
    %c0_17 = arith.constant 0 : index
    %c0_18 = arith.constant 0 : index
    %15 = vector.load %arg4[%c0_16, %c1, %c0_17, %c0_18] : memref<1x3x8x128xf32, #tpu.memory_space<vmem>>, vector<1x1x8x128xf32>
    %16 = vector.shape_cast %15 : vector<1x1x8x128xf32> to vector<8x128xf32>
    %17 = arith.mulf %6, %6 : vector<1x8x128xf32>
    %cst_19 = arith.constant dense<0.000000e+00> : vector<8x128xf32>
    %18 = vector.multi_reduction <add>, %17, %cst_19 [0] : vector<1x8x128xf32> to vector<8x128xf32>
    %19 = arith.addf %16, %18 : vector<8x128xf32>
    %c0_20 = arith.constant 0 : index
    %c1_21 = arith.constant 1 : index
    %c0_22 = arith.constant 0 : index
    %c0_23 = arith.constant 0 : index
    %20 = vector.load %arg4[%c0_20, %c1_21, %c0_22, %c0_23] : memref<1x3x8x128xf32, #tpu.memory_space<vmem>>, vector<1x1x8x128xf32>
    %21 = vector.shape_cast %20 : vector<1x1x8x128xf32> to vector<8x128xf32>
    %22 = vector.shape_cast %19 : vector<8x128xf32> to vector<1x1x8x128xf32>
    tpu.vector_store %arg4[%c0_20, %c1_21, %c0_22, %c0_23], %22 {strides = array<i32>} : memref<1x3x8x128xf32, #tpu.memory_space<vmem>>, vector<1x1x8x128xf32>,
    %c0_24 = arith.constant 0 : index
    %c2 = arith.constant 2 : index
    %c0_25 = arith.constant 0 : index
    %c0_26 = arith.constant 0 : index
    %23 = vector.load %arg4[%c0_24, %c2, %c0_25, %c0_26] : memref<1x3x8x128xf32, #tpu.memory_space<vmem>>, vector<1x1x8x128xf32>
    %24 = vector.shape_cast %23 : vector<1x1x8x128xf32> to vector<8x128xf32>
    %25 = arith.mulf %4, %6 : vector<1x8x128xf32>
    %cst_27 = arith.constant dense<0.000000e+00> : vector<8x128xf32>
    %26 = vector.multi_reduction <add>, %25, %cst_27 [0] : vector<1x8x128xf32> to vector<8x128xf32>
    %27 = arith.addf %24, %26 : vector<8x128xf32>
    %c0_28 = arith.constant 0 : index
    %c2_29 = arith.constant 2 : index
    %c0_30 = arith.constant 0 : index
    %c0_31 = arith.constant 0 : index
    %28 = vector.load %arg4[%c0_28, %c2_29, %c0_30, %c0_31] : memref<1x3x8x128xf32, #tpu.memory_space<vmem>>, vector<1x1x8x128xf32>
    %29 = vector.shape_cast %28 : vector<1x1x8x128xf32> to vector<8x128xf32>
    %30 = vector.shape_cast %27 : vector<8x128xf32> to vector<1x1x8x128xf32>
    tpu.vector_store %arg4[%c0_28, %c2_29, %c0_30, %c0_31], %30 {strides = array<i32>} : memref<1x3x8x128xf32, #tpu.memory_space<vmem>>, vector<1x1x8x128xf32>,
    return
  }
  func.func @transform_0(%arg0: i32, %arg1: i32) -> (i32, i32, i32, i32) {
    %c0_i32 = arith.constant 0 : i32
    %c0_i32_0 = arith.constant 0 : i32
    %c0_i32_1 = arith.constant 0 : i32
    return %arg0, %arg1, %c0_i32, %c0_i32_0 : i32, i32, i32, i32
  }
  func.func @transform_1(%arg0: i32, %arg1: i32) -> (i32, i32, i32, i32) {
    %c0_i32 = arith.constant 0 : i32
    %c0_i32_0 = arith.constant 0 : i32
    %c0_i32_1 = arith.constant 0 : i32
    return %arg0, %arg1, %c0_i32, %c0_i32_0 : i32, i32, i32, i32
  }
  func.func @transform_2(%arg0: i32, %arg1: i32) -> (i32, i32, i32, i32) {
    %c0_i32 = arith.constant 0 : i32
    %c0_i32_0 = arith.constant 0 : i32
    %c0_i32_1 = arith.constant 0 : i32
    %c0_i32_2 = arith.constant 0 : i32
    return %arg0, %c0_i32, %c0_i32_0, %c0_i32_1 : i32, i32, i32, i32
  }
}

</mosaic_0001>

<bundles_post_ra>
// kernel: normalized_mse_loss.1
= control target key start
LH: loop header
LB: loop body
LE: loop exit
PB: predicated region body
PF: predicated region fallthrough
CT: control target
= control target key end

     0   :  { %s378_s9 = smov 0   ;;  %s380_s10 = smov 0   ;;  %s402_s0 = inlined_call_operand.vmem [shape: f32[2,1,8,128], index: 0, kind: input, shape index: {}]   ;;  %s403_s1 = inlined_call_operand.vmem [shape: f32[2,1,8,128], index: 1, kind: input, shape index: {}]   ;;  %s404_s2 = inlined_call_operand.vmem [shape: f32[2,3,8,128], index: 2, kind: output, shape index: {}]  }
   0x1   :  { %s382_s11 = smov 0  }
   0x2 LB: > { %s24_s12 = sadd.s32 1, %s357_s10  ;;  %p303_p0 = scmp.ge.s32.totalorder %s361_s11, 1  ;;  %s361_s11 = sphi %s382_s11, %s12_s11   ;;  %s357_s10 = sphi %s380_s10, %s406_s10   ;;  %s353_s9 = sphi %s378_s9, %s405_s9  }
   0x3   : > { %p26_p1 = scmp.ge.s32.totalorder %s24_s12, 2  ;;  %p142_p2 = scmp.lt.s32.totalorder %s361_s11, 3 }
   0x5   : > { %s408_s12 = smov (%p26_p1, %s24_s12), 0  ;;  %p143_p3 = pnand %p303_p0, %p142_p2 }
   0x6   : > { %p173_p4 = scmp.lt.s32.totalorder (!%p143_p3), %s353_s9, 1 }
   0x7   : > { %146 = sbr.rel (%p143_p3) target bundleno = 21 (0x15), region = 28 }
   0xc   : > { %s410_s9 = smov (!%p173_p4, %s353_s9), 1 }
   0xd   : > { %s313_s13 = smul.u32 24, %s410_s9  ;;  %s304_s14 = sshll.u32 %s410_s9, 3 }
   0xe   : > { %s179_s17 = scalar_lea.vmem %s402_s0, %s304_s14  ;;  %s186_s20 = scalar_lea.vmem %s403_s1, %s304_s14 }
   0xf   : > { %v199_v0 = vld [vmem:[%s179_s17] sm:$0xff]  ;;  %s191_s23 = scalar_lea.vmem %s404_s2, %s313_s13 }
  0x10   : > { %v200_v1 = vld [vmem:[%s186_s20] sm:$0xff]  ;;  %v202_v2 = vmul.f32 %v199_v0, %v199_v0 }
  0x11   : > { %v208_v3 = vmul.f32 %v200_v1, %v200_v1  ;;  %v214_v4 = vmul.f32 %v200_v1, %v199_v0 }
  0x12   : > { %205 = vst [vmem:[%s191_s23] sm:$0xff] %v202_v2 }
  0x13   : > { %308 = vst [vmem:[%s191_s23 + $0x8] sm:$0xff] %v208_v3 }
  0x14   : > { %310 = vst [vmem:[%s191_s23 + $0x10] sm:$0xff] %v214_v4 }
  0x15 PF: > { %s12_s11 = sadd.s32 1, %s361_s11   ;;  %s405_s9 = smov %s357_s10 }
  0x16   : > { %p9_p5 = scmp.ge.s32.totalorder %s12_s11, 4   ;;  %s406_s10 = smov %s408_s12 }
  0x18   :  { %11 = sbr.rel (!%p9_p5) target bundleno = 2 (0x2), region = 67 }

</bundles_post_ra>
